<compile_context>
chip_gen: v7x
topology: tpu7x:2x2x1
jax: 0.10.0
libtpu: 0.0.40
codegen_flags: <defaults>
</compile_context>

<pallas_src>
import functools
import math

import jax
import jax.numpy as jnp
from jax.experimental import pallas as pl
from jax.experimental.pallas import tpu as pltpu


# ---------------------------------------------------------------------------
# Kernel: fused in-VMEM patchify + (rows, K) @ (K, N) projection
# ---------------------------------------------------------------------------

def _patch_embed_kernel(x_ref, w_ref, b_ref, o_ref, p_ref, *, cin, ps, k):
    """One grid step.

    x_ref : (Cin, hp_blk, ps, Wp, ps)  activation slab, straight from HBM
    w_ref : (K_pad, N)                 flattened conv weight (f32 or bf16)
    b_ref : (1, N)                     bias (f32)
    o_ref : (hp_blk, Wp, N)            output tokens (lane-dense over N)
    p_ref : (hp_blk, Wp, K_pad)        VMEM im2col scratch (f32 or bf16)
    """
    hp_blk, wp, k_pad = p_ref.shape

    # Zero the K-padding lanes every step: the scratch is uninitialised and on
    # v7x each TensorCore owns its own copy, so a "first step only" init is
    # not safe under megacore grid splitting.  This slice is tiny.
    if k_pad > k:
        p_ref[:, :, k:] = jnp.zeros((hp_blk, wp, k_pad - k), p_ref.dtype)

    # In-VMEM patchify: column block for within-patch element (c, i, j) is
    # (c*ps + i)*ps + j, matching the OIHW weight flatten.  Only strided
    # loads and lane-sliced stores — no transposes/reshapes in the kernel.
    for c in range(cin):
        for i in range(ps):
            col = (c * ps + i) * ps
            p_ref[:, :, col:col + ps] = x_ref[c, :, i, :, :].astype(p_ref.dtype)

    w = w_ref[...]            # hoisted: loaded once, reused across hp matmuls
    bias = b_ref[...]         # (1, N) f32
    for hp in range(hp_blk):
        acc = jnp.dot(p_ref[hp], w, preferred_element_type=jnp.float32)
        # f32 epilogue (bias add + cast) — keep it f32 for v5e's VPU.
        o_ref[hp] = (acc + bias).astype(o_ref.dtype)


# ---------------------------------------------------------------------------
# One-time parameter preparation (do this OUTSIDE the jitted forward)
# ---------------------------------------------------------------------------

def prepare_patch_embed_params(w, b, *, matmul_dtype=jnp.float32):
    """Flatten the Conv2d weight (N, Cin, ps, ps) -> (K_pad, N) once, and the
    bias -> (1, N) f32.  K is zero-padded up to a multiple of 128 so the MXU
    contraction is lane-aligned (the matching activation padding is zeroed in
    VMEM inside the kernel, costing no HBM bytes)."""
    n, cin, ps, ps2 = w.shape
    assert ps == ps2, "square patches expected"
    k = cin * ps * ps
    k_pad = ((k + 127) // 128) * 128
    w_mat = jnp.asarray(w).reshape(n, k).T.astype(matmul_dtype)   # (K, N), (c,i,j) order
    if k_pad > k:
        w_mat = jnp.pad(w_mat, ((0, k_pad - k), (0, 0)))
    b_row = jnp.asarray(b).reshape(1, n).astype(jnp.float32)
    return w_mat, b_row


def _pick_hp_block(hp, wp, row_target, prefer_multi_step):
    """Largest divisor of Hp whose row count (hp_blk*Wp) stays <= row_target;
    if B == 1, prefer >= 2 grid steps so both v7x TensorCores get work."""
    divisors = [d for d in range(1, hp + 1) if hp % d == 0]
    fitting = [d for d in divisors if d * wp <= max(row_target, wp)] or [1]
    blk = max(fitting)
    if prefer_multi_step and blk == hp and hp > 1:
        smaller = [d for d in fitting if d < hp]
        if smaller:
            blk = max(smaller)
    return blk


# ---------------------------------------------------------------------------
# Forward
# ---------------------------------------------------------------------------

def patch_embed_forward(x, w_mat, b_row, *, patch_size, overlap=False,
                        out_layout="NCHW", out_dtype=jnp.float32,
                        row_target=512):
    """PatchEmbed.forward (overlap=False).

    x      : (B, Cin, H, W)                        NCHW, like the PyTorch module
    w_mat  : (K_pad, N) from prepare_patch_embed_params
    b_row  : (1, N)     from prepare_patch_embed_params
    out_layout: "NCHW"   -> (B, N, H//ps, W//ps)   (module-exact, extra transpose)
                "tokens" -> (B, Hp*Wp, N)          (free reshape, recommended)
    """
    if overlap:
        # TODO(synk): overlap=True needs an overlapping-window gather.
        raise NotImplementedError("PatchEmbed overlap=True is not implemented")

    B, Cin, H, W = x.shape
    ps = patch_size
    assert H % ps == 0 and W % ps == 0, "image size must be divisible by patch"
    Hp, Wp = H // ps, W // ps
    K = Cin * ps * ps
    K_pad, N = w_mat.shape
    assert K_pad == ((K + 127) // 128) * 128, "w_mat/K mismatch: run prepare_patch_embed_params"

    # Free view (contiguous splits only — no HBM copy, unlike an im2col transpose).
    x6 = x.reshape(B, Cin, Hp, ps, Wp, ps)

    hp_blk = _pick_hp_block(Hp, Wp, row_target, prefer_multi_step=(B == 1))
    grid = (B, Hp // hp_blk)

    # --- VMEM budget (double-buffered in/out, resident weight, im2col scratch)
    itm_x = x.dtype.itemsize
    itm_w = w_mat.dtype.itemsize
    itm_o = jnp.dtype(out_dtype).itemsize
    vmem_bytes = (2 * Cin * hp_blk * ps * Wp * ps * itm_x      # x slab
                  + 2 * K_pad * N * itm_w                      # weight
                  + 2 * hp_blk * Wp * N * itm_o                # output tile
                  + hp_blk * Wp * K_pad * itm_w                # im2col scratch
                  + 2 * N * 4)                                 # bias
    assert vmem_bytes < 60 * 1024 * 1024, (
        f"VMEM budget {vmem_bytes/2**20:.1f} MiB exceeds v7x's 64 MiB; "
        f"lower row_target")
    compiler_kwargs = dict(dimension_semantics=("parallel", "parallel"))
    if vmem_bytes > 30 * 1024 * 1024:
        compiler_kwargs["vmem_limit_bytes"] = int(vmem_bytes * 5 // 4)

    cost = pl.CostEstimate(
        flops=2 * B * Hp * Wp * K * N,
        bytes_accessed=(x.size * itm_x + K_pad * N * itm_w
                        + B * Hp * Wp * N * itm_o),
        transcendentals=0)

    kernel = functools.partial(_patch_embed_kernel, cin=Cin, ps=ps, k=K)

    out4 = pl.pallas_call(
        kernel,
        out_shape=jax.ShapeDtypeStruct((B, Hp, Wp, N), out_dtype),
        grid=grid,
        in_specs=[
            # One (Cin, hp_blk, ps, Wp, ps) activation slab per step.
            pl.BlockSpec((None, Cin, hp_blk, ps, Wp, ps),
                         lambda b, h: (b, 0, h, 0, 0, 0)),
            # Weight / bias: constant block index -> fetched once, stays resident.
            pl.BlockSpec((K_pad, N), lambda b, h: (0, 0)),
            pl.BlockSpec((1, N), lambda b, h: (0, 0)),
        ],
        out_specs=pl.BlockSpec((None, hp_blk, Wp, N), lambda b, h: (b, h, 0, 0)),
        scratch_shapes=[pltpu.VMEM((hp_blk, Wp, K_pad), w_mat.dtype)],
        compiler_params=pltpu.CompilerParams(**compiler_kwargs),
        cost_estimate=cost,
    )(x6, w_mat, b_row)

    if out_layout == "NCHW":
        # Module-exact layout (costs one XLA transpose in HBM).
        return out4.transpose(0, 3, 1, 2)
    # Token-major (B, Hp*Wp, N): a free reshape, what transformer blocks want.
    return out4.reshape(B, Hp * Wp, N)


# ---------------------------------------------------------------------------

if __name__ == "__main__":
    # Small config: batch=2, in_chans=3, img 16x16, patch 4, embed_dim=128.
    B, Cin, Himg, Wimg = 2, 3, 16, 16
    ps, embed_dim = 4, 128

    key = jax.random.PRNGKey(0)
    kx, kw, kb = jax.random.split(key, 3)
    fan_in = Cin * ps * ps
    x = jax.random.normal(kx, (B, Cin, Himg, Wimg), jnp.float32)
    w = jax.random.uniform(kw, (embed_dim, Cin, ps, ps), jnp.float32,
                           -1.0, 1.0) / math.sqrt(float(fan_in))
    b = jax.random.uniform(kb, (embed_dim,), jnp.float32,
                           -1.0, 1.0) / math.sqrt(float(fan_in))

    # Weight/bias prepared ONCE, outside the jitted forward.
    w_mat_f32, b_row = prepare_patch_embed_params(w, b)
    w_mat_bf16, _ = prepare_patch_embed_params(w, b, matmul_dtype=jnp.bfloat16)

    fwd_nchw = jax.jit(functools.partial(
        patch_embed_forward, patch_size=ps, out_layout="NCHW"))
    fwd_tok = jax.jit(functools.partial(
        patch_embed_forward, patch_size=ps, out_layout="tokens"))
    fwd_bf16 = jax.jit(functools.partial(
        patch_embed_forward, patch_size=ps, out_layout="tokens",
        out_dtype=jnp.bfloat16))

    y_nchw = fwd_nchw(x, w_mat_f32, b_row)        # module-exact NCHW, f32
    y_tok = fwd_tok(x, w_mat_f32, b_row)          # token-major, f32
    y_bf16 = fwd_bf16(x, w_mat_bf16, b_row)       # token-major, bf16 at the dot
    jax.block_until_ready((y_nchw, y_tok, y_bf16))

    # Reference: exactly the Conv2d the PyTorch module performs.
    ref = jax.lax.conv_general_dilated(
        x, w, window_strides=(ps, ps), padding="VALID",
        dimension_numbers=("NCHW", "OIHW", "NCHW")) + b.reshape(1, -1, 1, 1)
    Hp, Wp = Himg // ps, Wimg // ps
    ref_tok = ref.transpose(0, 2, 3, 1).reshape(B, Hp * Wp, embed_dim)

    assert y_nchw.shape == (B, embed_dim, Hp, Wp) and y_nchw.dtype == jnp.float32
    assert jnp.allclose(y_nchw, ref, atol=1e-4, rtol=1e-4)
    assert y_tok.shape == (B, Hp * Wp, embed_dim)
    assert jnp.allclose(y_tok, ref_tok, atol=1e-4, rtol=1e-4)
    assert y_bf16.shape == (B, Hp * Wp, embed_dim) and y_bf16.dtype == jnp.bfloat16
    assert jnp.allclose(y_bf16.astype(jnp.float32), ref_tok, atol=5e-2, rtol=5e-2)
    print("KERNEL_OK")
</pallas_src>

<mosaic_0001>
module attributes {stable_mosaic.version = 11 : i64} {
  func.func @_patch_embed_kernel(%arg0: i32, %arg1: i32, %arg2: memref<1x3x4x4x4x4xf32, #tpu.memory_space<vmem>>, %arg3: memref<128x128xf32, #tpu.memory_space<vmem>>, %arg4: memref<1x128xf32, #tpu.memory_space<vmem>>, %arg5: memref<1x4x4x128xf32, #tpu.memory_space<vmem>>, %arg6: memref<4x4x128xf32, #tpu.memory_space<vmem>>) attributes {dimension_semantics = [#tpu.dimension_semantics<parallel>, #tpu.dimension_semantics<parallel>], iteration_bounds = array<i64: 2, 1>, scalar_prefetch = 0 : i64, scratch_operands = 1 : i64, tpu.core_type = #tpu.core_type<tc>, window_params = [{transform_indices = @transform_0, window_bounds = array<i64: 1, 3, 4, 4, 4, 4>}, {pipeline_mode = #tpu.pipeline_mode<synchronous>, transform_indices = @transform_1, window_bounds = array<i64: 128, 128>}, {pipeline_mode = #tpu.pipeline_mode<synchronous>, transform_indices = @transform_2, window_bounds = array<i64: 1, 128>}, {transform_indices = @transform_3, window_bounds = array<i64: 1, 4, 4, 128>}]} {
    %cst = arith.constant 0.000000e+00 : f32
    %0 = vector.broadcast %cst : f32 to vector<4x4x80xf32>
    %c0 = arith.constant 0 : index
    %c0_0 = arith.constant 0 : index
    %c48 = arith.constant 48 : index
    %1 = vector.load %arg6[%c0, %c0_0, %c48] : memref<4x4x128xf32, #tpu.memory_space<vmem>>, vector<4x4x80xf32>
    tpu.vector_store %arg6[%c0, %c0_0, %c48], %0 {strides = array<i32>} : memref<4x4x128xf32, #tpu.memory_space<vmem>>, vector<4x4x80xf32>,
    %c0_1 = arith.constant 0 : index
    %c0_2 = arith.constant 0 : index
    %c0_3 = arith.constant 0 : index
    %c0_4 = arith.constant 0 : index
    %c0_5 = arith.constant 0 : index
    %c0_6 = arith.constant 0 : index
    %2 = vector.load %arg2[%c0_1, %c0_2, %c0_3, %c0_4, %c0_5, %c0_6] : memref<1x3x4x4x4x4xf32, #tpu.memory_space<vmem>>, vector<1x1x4x1x4x4xf32>
    %3 = vector.shape_cast %2 : vector<1x1x4x1x4x4xf32> to vector<4x4x4xf32>
    %c0_7 = arith.constant 0 : index
    %c0_8 = arith.constant 0 : index
    %c0_9 = arith.constant 0 : index
    %4 = vector.load %arg6[%c0_7, %c0_8, %c0_9] : memref<4x4x128xf32, #tpu.memory_space<vmem>>, vector<4x4x4xf32>
    tpu.vector_store %arg6[%c0_7, %c0_8, %c0_9], %3 {strides = array<i32>} : memref<4x4x128xf32, #tpu.memory_space<vmem>>, vector<4x4x4xf32>,
    %c0_10 = arith.constant 0 : index
    %c0_11 = arith.constant 0 : index
    %c0_12 = arith.constant 0 : index
    %c1 = arith.constant 1 : index
    %c0_13 = arith.constant 0 : index
    %c0_14 = arith.constant 0 : index
    %5 = vector.load %arg2[%c0_10, %c0_11, %c0_12, %c1, %c0_13, %c0_14] : memref<1x3x4x4x4x4xf32, #tpu.memory_space<vmem>>, vector<1x1x4x1x4x4xf32>
    %6 = vector.shape_cast %5 : vector<1x1x4x1x4x4xf32> to vector<4x4x4xf32>
    %c0_15 = arith.constant 0 : index
    %c0_16 = arith.constant 0 : index
    %c4 = arith.constant 4 : index
    %7 = vector.load %arg6[%c0_15, %c0_16, %c4] : memref<4x4x128xf32, #tpu.memory_space<vmem>>, vector<4x4x4xf32>
    tpu.vector_store %arg6[%c0_15, %c0_16, %c4], %6 {strides = array<i32>} : memref<4x4x128xf32, #tpu.memory_space<vmem>>, vector<4x4x4xf32>,
    %c0_17 = arith.constant 0 : index
    %c0_18 = arith.constant 0 : index
    %c0_19 = arith.constant 0 : index
    %c2 = arith.constant 2 : index
    %c0_20 = arith.constant 0 : index
    %c0_21 = arith.constant 0 : index
    %8 = vector.load %arg2[%c0_17, %c0_18, %c0_19, %c2, %c0_20, %c0_21] : memref<1x3x4x4x4x4xf32, #tpu.memory_space<vmem>>, vector<1x1x4x1x4x4xf32>
    %9 = vector.shape_cast %8 : vector<1x1x4x1x4x4xf32> to vector<4x4x4xf32>
    %c0_22 = arith.constant 0 : index
    %c0_23 = arith.constant 0 : index
    %c8 = arith.constant 8 : index
    %10 = vector.load %arg6[%c0_22, %c0_23, %c8] : memref<4x4x128xf32, #tpu.memory_space<vmem>>, vector<4x4x4xf32>
    tpu.vector_store %arg6[%c0_22, %c0_23, %c8], %9 {strides = array<i32>} : memref<4x4x128xf32, #tpu.memory_space<vmem>>, vector<4x4x4xf32>,
    %c0_24 = arith.constant 0 : index
    %c0_25 = arith.constant 0 : index
    %c0_26 = arith.constant 0 : index
    %c3 = arith.constant 3 : index
    %c0_27 = arith.constant 0 : index
    %c0_28 = arith.constant 0 : index
    %11 = vector.load %arg2[%c0_24, %c0_25, %c0_26, %c3, %c0_27, %c0_28] : memref<1x3x4x4x4x4xf32, #tpu.memory_space<vmem>>, vector<1x1x4x1x4x4xf32>
    %12 = vector.shape_cast %11 : vector<1x1x4x1x4x4xf32> to vector<4x4x4xf32>
    %c0_29 = arith.constant 0 : index
    %c0_30 = arith.constant 0 : index
    %c12 = arith.constant 12 : index
    %13 = vector.load %arg6[%c0_29, %c0_30, %c12] : memref<4x4x128xf32, #tpu.memory_space<vmem>>, vector<4x4x4xf32>
    tpu.vector_store %arg6[%c0_29, %c0_30, %c12], %12 {strides = array<i32>} : memref<4x4x128xf32, #tpu.memory_space<vmem>>, vector<4x4x4xf32>,
    %c0_31 = arith.constant 0 : index
    %c1_32 = arith.constant 1 : index
    %c0_33 = arith.constant 0 : index
    %c0_34 = arith.constant 0 : index
    %c0_35 = arith.constant 0 : index
    %c0_36 = arith.constant 0 : index
    %14 = vector.load %arg2[%c0_31, %c1_32, %c0_33, %c0_34, %c0_35, %c0_36] : memref<1x3x4x4x4x4xf32, #tpu.memory_space<vmem>>, vector<1x1x4x1x4x4xf32>
    %15 = vector.shape_cast %14 : vector<1x1x4x1x4x4xf32> to vector<4x4x4xf32>
    %c0_37 = arith.constant 0 : index
    %c0_38 = arith.constant 0 : index
    %c16 = arith.constant 16 : index
    %16 = vector.load %arg6[%c0_37, %c0_38, %c16] : memref<4x4x128xf32, #tpu.memory_space<vmem>>, vector<4x4x4xf32>
    tpu.vector_store %arg6[%c0_37, %c0_38, %c16], %15 {strides = array<i32>} : memref<4x4x128xf32, #tpu.memory_space<vmem>>, vector<4x4x4xf32>,
    %c0_39 = arith.constant 0 : index
    %c1_40 = arith.constant 1 : index
    %c0_41 = arith.constant 0 : index
    %c1_42 = arith.constant 1 : index
    %c0_43 = arith.constant 0 : index
    %c0_44 = arith.constant 0 : index
    %17 = vector.load %arg2[%c0_39, %c1_40, %c0_41, %c1_42, %c0_43, %c0_44] : memref<1x3x4x4x4x4xf32, #tpu.memory_space<vmem>>, vector<1x1x4x1x4x4xf32>
    %18 = vector.shape_cast %17 : vector<1x1x4x1x4x4xf32> to vector<4x4x4xf32>
    %c0_45 = arith.constant 0 : index
    %c0_46 = arith.constant 0 : index
    %c20 = arith.constant 20 : index
    %19 = vector.load %arg6[%c0_45, %c0_46, %c20] : memref<4x4x128xf32, #tpu.memory_space<vmem>>, vector<4x4x4xf32>
    tpu.vector_store %arg6[%c0_45, %c0_46, %c20], %18 {strides = array<i32>} : memref<4x4x128xf32, #tpu.memory_space<vmem>>, vector<4x4x4xf32>,
    %c0_47 = arith.constant 0 : index
    %c1_48 = arith.constant 1 : index
    %c0_49 = arith.constant 0 : index
    %c2_50 = arith.constant 2 : index
    %c0_51 = arith.constant 0 : index
    %c0_52 = arith.constant 0 : index
    %20 = vector.load %arg2[%c0_47, %c1_48, %c0_49, %c2_50, %c0_51, %c0_52] : memref<1x3x4x4x4x4xf32, #tpu.memory_space<vmem>>, vector<1x1x4x1x4x4xf32>
    %21 = vector.shape_cast %20 : vector<1x1x4x1x4x4xf32> to vector<4x4x4xf32>
    %c0_53 = arith.constant 0 : index
    %c0_54 = arith.constant 0 : index
    %c24 = arith.constant 24 : index
    %22 = vector.load %arg6[%c0_53, %c0_54, %c24] : memref<4x4x128xf32, #tpu.memory_space<vmem>>, vector<4x4x4xf32>
    tpu.vector_store %arg6[%c0_53, %c0_54, %c24], %21 {strides = array<i32>} : memref<4x4x128xf32, #tpu.memory_space<vmem>>, vector<4x4x4xf32>,
    %c0_55 = arith.constant 0 : index
    %c1_56 = arith.constant 1 : index
    %c0_57 = arith.constant 0 : index
    %c3_58 = arith.constant 3 : index
    %c0_59 = arith.constant 0 : index
    %c0_60 = arith.constant 0 : index
    %23 = vector.load %arg2[%c0_55, %c1_56, %c0_57, %c3_58, %c0_59, %c0_60] : memref<1x3x4x4x4x4xf32, #tpu.memory_space<vmem>>, vector<1x1x4x1x4x4xf32>
    %24 = vector.shape_cast %23 : vector<1x1x4x1x4x4xf32> to vector<4x4x4xf32>
    %c0_61 = arith.constant 0 : index
    %c0_62 = arith.constant 0 : index
    %c28 = arith.constant 28 : index
    %25 = vector.load %arg6[%c0_61, %c0_62, %c28] : memref<4x4x128xf32, #tpu.memory_space<vmem>>, vector<4x4x4xf32>
    tpu.vector_store %arg6[%c0_61, %c0_62, %c28], %24 {strides = array<i32>} : memref<4x4x128xf32, #tpu.memory_space<vmem>>, vector<4x4x4xf32>,
    %c0_63 = arith.constant 0 : index
    %c2_64 = arith.constant 2 : index
    %c0_65 = arith.constant 0 : index
    %c0_66 = arith.constant 0 : index
    %c0_67 = arith.constant 0 : index
    %c0_68 = arith.constant 0 : index
    %26 = vector.load %arg2[%c0_63, %c2_64, %c0_65, %c0_66, %c0_67, %c0_68] : memref<1x3x4x4x4x4xf32, #tpu.memory_space<vmem>>, vector<1x1x4x1x4x4xf32>
    %27 = vector.shape_cast %26 : vector<1x1x4x1x4x4xf32> to vector<4x4x4xf32>
    %c0_69 = arith.constant 0 : index
    %c0_70 = arith.constant 0 : index
    %c32 = arith.constant 32 : index
    %28 = vector.load %arg6[%c0_69, %c0_70, %c32] : memref<4x4x128xf32, #tpu.memory_space<vmem>>, vector<4x4x4xf32>
    tpu.vector_store %arg6[%c0_69, %c0_70, %c32], %27 {strides = array<i32>} : memref<4x4x128xf32, #tpu.memory_space<vmem>>, vector<4x4x4xf32>,
    %c0_71 = arith.constant 0 : index
    %c2_72 = arith.constant 2 : index
    %c0_73 = arith.constant 0 : index
    %c1_74 = arith.constant 1 : index
    %c0_75 = arith.constant 0 : index
    %c0_76 = arith.constant 0 : index
    %29 = vector.load %arg2[%c0_71, %c2_72, %c0_73, %c1_74, %c0_75, %c0_76] : memref<1x3x4x4x4x4xf32, #tpu.memory_space<vmem>>, vector<1x1x4x1x4x4xf32>
    %30 = vector.shape_cast %29 : vector<1x1x4x1x4x4xf32> to vector<4x4x4xf32>
    %c0_77 = arith.constant 0 : index
    %c0_78 = arith.constant 0 : index
    %c36 = arith.constant 36 : index
    %31 = vector.load %arg6[%c0_77, %c0_78, %c36] : memref<4x4x128xf32, #tpu.memory_space<vmem>>, vector<4x4x4xf32>
    tpu.vector_store %arg6[%c0_77, %c0_78, %c36], %30 {strides = array<i32>} : memref<4x4x128xf32, #tpu.memory_space<vmem>>, vector<4x4x4xf32>,
    %c0_79 = arith.constant 0 : index
    %c2_80 = arith.constant 2 : index
    %c0_81 = arith.constant 0 : index
    %c2_82 = arith.constant 2 : index
    %c0_83 = arith.constant 0 : index
    %c0_84 = arith.constant 0 : index
    %32 = vector.load %arg2[%c0_79, %c2_80, %c0_81, %c2_82, %c0_83, %c0_84] : memref<1x3x4x4x4x4xf32, #tpu.memory_space<vmem>>, vector<1x1x4x1x4x4xf32>
    %33 = vector.shape_cast %32 : vector<1x1x4x1x4x4xf32> to vector<4x4x4xf32>
    %c0_85 = arith.constant 0 : index
    %c0_86 = arith.constant 0 : index
    %c40 = arith.constant 40 : index
    %34 = vector.load %arg6[%c0_85, %c0_86, %c40] : memref<4x4x128xf32, #tpu.memory_space<vmem>>, vector<4x4x4xf32>
    tpu.vector_store %arg6[%c0_85, %c0_86, %c40], %33 {strides = array<i32>} : memref<4x4x128xf32, #tpu.memory_space<vmem>>, vector<4x4x4xf32>,
    %c0_87 = arith.constant 0 : index
    %c2_88 = arith.constant 2 : index
    %c0_89 = arith.constant 0 : index
    %c3_90 = arith.constant 3 : index
    %c0_91 = arith.constant 0 : index
    %c0_92 = arith.constant 0 : index
    %35 = vector.load %arg2[%c0_87, %c2_88, %c0_89, %c3_90, %c0_91, %c0_92] : memref<1x3x4x4x4x4xf32, #tpu.memory_space<vmem>>, vector<1x1x4x1x4x4xf32>
    %36 = vector.shape_cast %35 : vector<1x1x4x1x4x4xf32> to vector<4x4x4xf32>
    %c0_93 = arith.constant 0 : index
    %c0_94 = arith.constant 0 : index
    %c44 = arith.constant 44 : index
    %37 = vector.load %arg6[%c0_93, %c0_94, %c44] : memref<4x4x128xf32, #tpu.memory_space<vmem>>, vector<4x4x4xf32>
    tpu.vector_store %arg6[%c0_93, %c0_94, %c44], %36 {strides = array<i32>} : memref<4x4x128xf32, #tpu.memory_space<vmem>>, vector<4x4x4xf32>,
    %c0_95 = arith.constant 0 : index
    %c0_96 = arith.constant 0 : index
    %38 = vector.load %arg3[%c0_95, %c0_96] : memref<128x128xf32, #tpu.memory_space<vmem>>, vector<128x128xf32>
    %c0_97 = arith.constant 0 : index
    %c0_98 = arith.constant 0 : index
    %39 = vector.load %arg4[%c0_97, %c0_98] : memref<1x128xf32, #tpu.memory_space<vmem>>, vector<1x128xf32>
    %c0_99 = arith.constant 0 : index
    %c0_100 = arith.constant 0 : index
    %c0_101 = arith.constant 0 : index
    %40 = vector.load %arg6[%c0_99, %c0_100, %c0_101] : memref<4x4x128xf32, #tpu.memory_space<vmem>>, vector<1x4x128xf32>
    %41 = vector.shape_cast %40 : vector<1x4x128xf32> to vector<4x128xf32>
    %cst_102 = arith.constant dense<0.000000e+00> : vector<4x128xf32>
    %42 = tpu.matmul %41, %38, %cst_102 {dimension_numbers = #tpu.dot_dimension_numbers<[1], [0], [0], [1], [0, 0, 1, 1], [], []>} : vector<4x128xf32>, vector<128x128xf32>, vector<4x128xf32> -> vector<4x128xf32>
    %43 = vector.broadcast %39 : vector<1x128xf32> to vector<4x128xf32>
    %44 = arith.addf %42, %43 : vector<4x128xf32>
    %c0_103 = arith.constant 0 : index
    %c0_104 = arith.constant 0 : index
    %c0_105 = arith.constant 0 : index
    %c0_106 = arith.constant 0 : index
    %45 = vector.load %arg5[%c0_103, %c0_104, %c0_105, %c0_106] : memref<1x4x4x128xf32, #tpu.memory_space<vmem>>, vector<1x1x4x128xf32>
    %46 = vector.shape_cast %45 : vector<1x1x4x128xf32> to vector<4x128xf32>
    %47 = vector.shape_cast %44 : vector<4x128xf32> to vector<1x1x4x128xf32>
    tpu.vector_store %arg5[%c0_103, %c0_104, %c0_105, %c0_106], %47 {strides = array<i32>} : memref<1x4x4x128xf32, #tpu.memory_space<vmem>>, vector<1x1x4x128xf32>,
    %c1_107 = arith.constant 1 : index
    %c0_108 = arith.constant 0 : index
    %c0_109 = arith.constant 0 : index
    %48 = vector.load %arg6[%c1_107, %c0_108, %c0_109] : memref<4x4x128xf32, #tpu.memory_space<vmem>>, vector<1x4x128xf32>
    %49 = vector.shape_cast %48 : vector<1x4x128xf32> to vector<4x128xf32>
    %cst_110 = arith.constant dense<0.000000e+00> : vector<4x128xf32>
    %50 = tpu.matmul %49, %38, %cst_110 {dimension_numbers = #tpu.dot_dimension_numbers<[1], [0], [0], [1], [0, 0, 1, 1], [], []>} : vector<4x128xf32>, vector<128x128xf32>, vector<4x128xf32> -> vector<4x128xf32>
    %51 = vector.broadcast %39 : vector<1x128xf32> to vector<4x128xf32>
    %52 = arith.addf %50, %51 : vector<4x128xf32>
    %c0_111 = arith.constant 0 : index
    %c1_112 = arith.constant 1 : index
    %c0_113 = arith.constant 0 : index
    %c0_114 = arith.constant 0 : index
    %53 = vector.load %arg5[%c0_111, %c1_112, %c0_113, %c0_114] : memref<1x4x4x128xf32, #tpu.memory_space<vmem>>, vector<1x1x4x128xf32>
    %54 = vector.shape_cast %53 : vector<1x1x4x128xf32> to vector<4x128xf32>
    %55 = vector.shape_cast %52 : vector<4x128xf32> to vector<1x1x4x128xf32>
    tpu.vector_store %arg5[%c0_111, %c1_112, %c0_113, %c0_114], %55 {strides = array<i32>} : memref<1x4x4x128xf32, #tpu.memory_space<vmem>>, vector<1x1x4x128xf32>,
    %c2_115 = arith.constant 2 : index
    %c0_116 = arith.constant 0 : index
    %c0_117 = arith.constant 0 : index
    %56 = vector.load %arg6[%c2_115, %c0_116, %c0_117] : memref<4x4x128xf32, #tpu.memory_space<vmem>>, vector<1x4x128xf32>
    %57 = vector.shape_cast %56 : vector<1x4x128xf32> to vector<4x128xf32>
    %cst_118 = arith.constant dense<0.000000e+00> : vector<4x128xf32>
    %58 = tpu.matmul %57, %38, %cst_118 {dimension_numbers = #tpu.dot_dimension_numbers<[1], [0], [0], [1], [0, 0, 1, 1], [], []>} : vector<4x128xf32>, vector<128x128xf32>, vector<4x128xf32> -> vector<4x128xf32>
    %59 = vector.broadcast %39 : vector<1x128xf32> to vector<4x128xf32>
    %60 = arith.addf %58, %59 : vector<4x128xf32>
    %c0_119 = arith.constant 0 : index
    %c2_120 = arith.constant 2 : index
    %c0_121 = arith.constant 0 : index
    %c0_122 = arith.constant 0 : index
    %61 = vector.load %arg5[%c0_119, %c2_120, %c0_121, %c0_122] : memref<1x4x4x128xf32, #tpu.memory_space<vmem>>, vector<1x1x4x128xf32>
    %62 = vector.shape_cast %61 : vector<1x1x4x128xf32> to vector<4x128xf32>
    %63 = vector.shape_cast %60 : vector<4x128xf32> to vector<1x1x4x128xf32>
    tpu.vector_store %arg5[%c0_119, %c2_120, %c0_121, %c0_122], %63 {strides = array<i32>} : memref<1x4x4x128xf32, #tpu.memory_space<vmem>>, vector<1x1x4x128xf32>,
    %c3_123 = arith.constant 3 : index
    %c0_124 = arith.constant 0 : index
    %c0_125 = arith.constant 0 : index
    %64 = vector.load %arg6[%c3_123, %c0_124, %c0_125] : memref<4x4x128xf32, #tpu.memory_space<vmem>>, vector<1x4x128xf32>
    %65 = vector.shape_cast %64 : vector<1x4x128xf32> to vector<4x128xf32>
    %cst_126 = arith.constant dense<0.000000e+00> : vector<4x128xf32>
    %66 = tpu.matmul %65, %38, %cst_126 {dimension_numbers = #tpu.dot_dimension_numbers<[1], [0], [0], [1], [0, 0, 1, 1], [], []>} : vector<4x128xf32>, vector<128x128xf32>, vector<4x128xf32> -> vector<4x128xf32>
    %67 = vector.broadcast %39 : vector<1x128xf32> to vector<4x128xf32>
    %68 = arith.addf %66, %67 : vector<4x128xf32>
    %c0_127 = arith.constant 0 : index
    %c3_128 = arith.constant 3 : index
    %c0_129 = arith.constant 0 : index
    %c0_130 = arith.constant 0 : index
    %69 = vector.load %arg5[%c0_127, %c3_128, %c0_129, %c0_130] : memref<1x4x4x128xf32, #tpu.memory_space<vmem>>, vector<1x1x4x128xf32>
    %70 = vector.shape_cast %69 : vector<1x1x4x128xf32> to vector<4x128xf32>
    %71 = vector.shape_cast %68 : vector<4x128xf32> to vector<1x1x4x128xf32>
    tpu.vector_store %arg5[%c0_127, %c3_128, %c0_129, %c0_130], %71 {strides = array<i32>} : memref<1x4x4x128xf32, #tpu.memory_space<vmem>>, vector<1x1x4x128xf32>,
    return
  }
  func.func @transform_0(%arg0: i32, %arg1: i32) -> (i32, i32, i32, i32, i32, i32) {
    %c0_i32 = arith.constant 0 : i32
    %c0_i32_0 = arith.constant 0 : i32
    %c0_i32_1 = arith.constant 0 : i32
    %c0_i32_2 = arith.constant 0 : i32
    %c0_i32_3 = arith.constant 0 : i32
    return %arg0, %c0_i32, %arg1, %c0_i32_0, %c0_i32_1, %c0_i32_2 : i32, i32, i32, i32, i32, i32
  }
  func.func @transform_1(%arg0: i32, %arg1: i32) -> (i32, i32) {
    %c0_i32 = arith.constant 0 : i32
    %c0_i32_0 = arith.constant 0 : i32
    %c0_i32_1 = arith.constant 0 : i32
    return %c0_i32, %c0_i32_0 : i32, i32
  }
  func.func @transform_2(%arg0: i32, %arg1: i32) -> (i32, i32) {
    %c0_i32 = arith.constant 0 : i32
    %c0_i32_0 = arith.constant 0 : i32
    %c0_i32_1 = arith.constant 0 : i32
    return %c0_i32, %c0_i32_0 : i32, i32
  }
  func.func @transform_3(%arg0: i32, %arg1: i32) -> (i32, i32, i32, i32) {
    %c0_i32 = arith.constant 0 : i32
    %c0_i32_0 = arith.constant 0 : i32
    %c0_i32_1 = arith.constant 0 : i32
    return %arg0, %arg1, %c0_i32, %c0_i32_0 : i32, i32, i32, i32
  }
}

</mosaic_0001>

<bundles_post_ra>
// kernel: patch_embed_forward.1
= control target key start
LH: loop header
LB: loop body
LE: loop exit
PB: predicated region body
PF: predicated region fallthrough
CT: control target
= control target key end

     0   :  { %8 = vsyncpa [#allocation4], 0  ;;  %s1871_s0 = inlined_call_operand.vmem [shape: f32[2,3,4,4,4,4], index: 0, kind: input, shape index: {}]   ;;  %s1872_s1 = inlined_call_operand.vmem [shape: f32[128,128], index: 1, kind: input, shape index: {}]   ;;  %s1873_s2 = inlined_call_operand.vmem [shape: f32[1,128], index: 2, kind: input, shape index: {}]   ;;  %s1874_s3 = inlined_call_operand.hbm [shape: f32[2,4,4,128], index: 3, kind: output, shape index: {}]  }
   0x1   :  { %10 = vsyncpa [#allocation4 + $0x1], 0  ;;  %s1470_s12 = smov 0   ;;  %s1472_s13 = smov 0  }
   0x2   :  { %s1474_s14 = smov 0   ;;  %s1476_s15 = smov 0  }
   0x3   :  { %s1478_s16 = smov 0   ;;  %s1480_s17 = smov 0  }
   0x4 LB: > { %s918_s18 = sadd.s32 4294967295, %s1432_s17   ;;  %s919_s19 = sadd.s32 4294967294, %s1432_s17   ;;  %s1432_s17 = sphi %s1480_s17, %s16_s17   ;;  %s1428_s16 = sphi %s1478_s16, %s1881_s16   ;;  %s1424_s15 = sphi %s1476_s15, %s1880_s15   ;;  %s1420_s14 = sphi %s1474_s14, %s1879_s14   ;;  %s1416_s13 = sphi %s1472_s13, %s1878_s13   ;;  %s1412_s12 = sphi %s1470_s12, %s1877_s12  }
   0x5   : > { %s28_s20 = sadd.s32 1, %s1428_s16  ;;  %s107_s21 = sadd.s32 1, %s1420_s14 }
   0x6   : > { %p30_p0 = scmp.ge.s32.totalorder %s28_s20, 2  ;;  %p117_p1 = scmp.ne.s32.totalorder %s1420_s14, %s1416_s13 }
   0x7   : > { %p118_p2 = scmp.eq.s32.totalorder %s918_s18, 1  ;;  %p123_p3 = scmp.ne.s32.totalorder %s1416_s13, %s1412_s12 }
   0x8   : > { %s1883_s20 = smov (%p30_p0, %s28_s20), 0  ;;  %p124_p5 = scmp.eq.s32.totalorder %s919_s19, 1 }
   0x9   : > { %p1510_p4 = por %p118_p2, %p117_p1  ;;  %s102_s23 = ssub.s32 %s1428_s16, %s1883_s20 }
   0xa   : > { %p922_p6 = scmp.ge.s32.totalorder %s1432_s17, 1  ;;  %p105_p7 = scmp.eq.s32.totalorder %s102_s23, 0 }
   0xb   : > { %p1517_p8 = por %p124_p5, %p123_p3  ;;  %p162_p9 = scmp.lt.s32.totalorder %s1432_s17, 3 }
   0xc   : > { %s1523_s25 = scalar_select %p105_p7, %s1420_s14, %s107_s21  }
   0xd   : > { %p163_p10 = pnand %p922_p6, %p162_p9 }
   0xe   : > { %p192_p11 = scmp.lt.s32.totalorder (!%p163_p10), %s1424_s15, 1  ;;  %vm203_vm0 = vcmask (!%p163_p10), 1043840   ;;  %v1434_v0 = vmov (!%p163_p10), 0.0   ;;  %s1435_s4 = smov (!%p163_p10), 8   ;;  %v1437_v7 = vmov (!%p163_p10), 0.0|0.0   ;;  %vm212_vm1 = vcmask (!%p163_p10), 27648  }
   0xf   : > { %166 = sbr.rel (%p163_p10) target bundleno = 464 (0x1d0), region = 32  ;;  %204 = vst.msk [vmem:[#allocation2] sm:$0xf] (!%p163_p10), %vm203_vm0, %v1434_v0  ;;  %205 = vst.msk [vmem:[#allocation2 + $0x4] sm:$0xf] (!%p163_p10), %vm203_vm0, %v1434_v0  ;;  %s1436_s5 = smov (!%p163_p10), 4   ;;  %1187 = vmatprep.subr.bf16.mxu0 (!%p163_p10), %v1437_v7  ;;  %1211 = vmatprep.subr.bf16.mxu1 (!%p163_p10), %v1437_v7 }
  0x10   : > { %206 = vst.msk [vmem:[#allocation2 + $0x8] sm:$0xf] (!%p163_p10), %vm203_vm0, %v1434_v0  ;;  %207 = vst.msk [vmem:[#allocation2 + $0xc] sm:$0xf] (!%p163_p10), %vm203_vm0, %v1434_v0  ;;  %s1438_s6 = smov (!%p163_p10), 12   ;;  %s1439_s7 = smov (!%p163_p10), 16  }
  0x11   : > { %v503_v14 = vld [vmem:[%s1872_s1] sm:$0xff] (!%p163_p10)  ;;  %s1440_s10 = smov (!%p163_p10), 20   ;;  %v504_v15 = vld [vmem:[%s1872_s1 + $0x8] sm:$0xff] (!%p163_p10)  ;;  %v505_v16 = vld [vmem:[%s1872_s1 + $0x10] sm:$0xff] (!%p163_p10)  ;;  %s1442_s11 = smov (!%p163_p10), 28   ;;  %vm1445_vm2 = vmmov (!%p163_p10), 0  }
  0x12   : > { %v1573_v19 = vpack.c.bf16 (!%p163_p10), %v504_v15, %v503_v14  ;;  %v506_v20 = vld [vmem:[%s1872_s1 + $0x18] sm:$0xff] (!%p163_p10)  ;;  %v507_v22 = vld [vmem:[%s1872_s1 + $0x20] sm:$0xff] (!%p163_p10)  ;;  %v508_v23 = vld [vmem:[%s1872_s1 + $0x28] sm:$0xff] (!%p163_p10)  ;;  %s1444_s18 = smov (!%p163_p10), 36   ;;  %1079 = vmatprep.mubr.msk.f32.mxu0 (!%p163_p10), %vm1445_vm2, %v1434_v0  ;;  %1114 = vmatprep.mubr.msk.f32.mxu1 (!%p163_p10), %vm1445_vm2, %v1434_v0  ;;  %s1446_s29 = smov (!%p163_p10), 40   ;;  %vm238_vm3 = vcmask (!%p163_p10), 60448  }
  0x13   : > { %v1580_v21 = vpack.c.bf16 (!%p163_p10), %v506_v20, %v505_v16  ;;  %v1596_v26 = vpack.c.bf16 (!%p163_p10), %v508_v23, %v507_v22  ;;  %v509_v27 = vld [vmem:[%s1872_s1 + $0x30] sm:$0xff] (!%p163_p10)  ;;  %v510_v28 = vld [vmem:[%s1872_s1 + $0x38] sm:$0xff] (!%p163_p10)  ;;  %v511_v33 = vld [vmem:[%s1872_s1 + $0x40] sm:$0xff] (!%p163_p10)  ;;  %s1447_s23 = smov (!%p163_p10), 44   ;;  %vm264_vm4 = vcmask (!%p163_p10), 93248   ;;  %vm290_vm5 = vcmask (!%p163_p10), 126048  }
  0x14   : > { %1189 = vmatpush3.bf16.msra.mxu0 (!%p163_p10), %v1573_v19  ;;  %1213 = vmatpush3.bf16.msra.mxu1 (!%p163_p10), %v1573_v19  ;;  %v1613_v32 = vpack.c.bf16 (!%p163_p10), %v510_v28, %v509_v27  ;;  %v512_v34 = vld [vmem:[%s1872_s1 + $0x48] sm:$0xff] (!%p163_p10)  ;;  %v513_v39 = vld [vmem:[%s1872_s1 + $0x50] sm:$0xff] (!%p163_p10)  ;;  %v514_v40 = vld [vmem:[%s1872_s1 + $0x58] sm:$0xff] (!%p163_p10)  ;;  %vm316_vm6 = vcmask (!%p163_p10), 158848   ;;  %vm342_vm7 = vcmask (!%p163_p10), 191648   ;;  %vm368_vm8 = vcmask (!%p163_p10), 224448  }
  0x15   : > { %1190 = vmatprep.subr.bf16.mxu0 (!%p163_p10), %v1437_v7  ;;  %1214 = vmatprep.subr.bf16.mxu1 (!%p163_p10), %v1437_v7  ;;  %v1632_v38 = vpack.c.bf16 (!%p163_p10), %v512_v34, %v511_v33  ;;  %v1652_v43 = vpack.c.bf16 (!%p163_p10), %v514_v40, %v513_v39  ;;  %v515_v44 = vld [vmem:[%s1872_s1 + $0x60] sm:$0xff] (!%p163_p10)  ;;  %v516_v45 = vld [vmem:[%s1872_s1 + $0x68] sm:$0xff] (!%p163_p10)  ;;  %v517_v49 = vld [vmem:[%s1872_s1 + $0x70] sm:$0xff] (!%p163_p10)  ;;  %vm394_vm9 = vcmask (!%p163_p10), 257248   ;;  %vm420_vm10 = vcmask (!%p163_p10), 290048  }
  0x16   : > { %s193_s26 = scalar_select %p192_p11, %s1424_s15, 1  ;;  %v1668_v48 = vpack.c.bf16 %v516_v45, %v515_v44  ;;  %v518_v50 = vld [vmem:[%s1872_s1 + $0x78] sm:$0xff]  ;;  %vm446_vm11 = vcmask 322848   ;;  %vm472_vm12 = vcmask 355648   ;;  %vm498_vm13 = vcmask 388448  }
  0x17   : > { %v1684_v53 = vpack.c.bf16 %v518_v50, %v517_v49 }
  0x18   : > { %s1283_s27 = smul.u32 192, %s193_s26  ;;  %1192 = vmatpush3.bf16.msra.mxu0 %v1580_v21  ;;  %1216 = vmatpush3.bf16.msra.mxu1 %v1580_v21  ;;  %s1443_s26 = smov 32  }
  0x19   : > { %1193 = vmatprep.subr.bf16.mxu0 %v1437_v7  ;;  %1217 = vmatprep.subr.bf16.mxu1 %v1437_v7 }
  0x1a   : > { %s1534_s30 = scalar_lea.vmem %s1871_s0, %s1283_s27  ;;  %s1441_s27 = smov 24  }
  0x1b   : > { %v929_v1 = vld [vmem:[%s1534_s30 + $0x8] sm:$0xf]  ;;  %v925_v2 = vld [vmem:[%s1534_s30 + $0x4] sm:$0xf]  ;;  %v930_v3 = vld [vmem:[%s1534_s30 + $0x18] sm:$0xf] }
  0x1c   : > { %252 = vrot.lane.b32.xlu1 %v929_v1, %s1435_s4  ;;  %226 = vrot.lane.b32.xlu0 %v925_v2, %s1436_s5  ;;  %v926_v4 = vld [vmem:[%s1534_s30 + $0x14] sm:$0xf]  ;;  %v934_v5 = vld [vmem:[%s1534_s30 + $0x1c] sm:$0xf] }
  0x1d   : > { %v933_v6 = vld [vmem:[%s1534_s30 + $0xc] sm:$0xf]  ;;  %v938_v8 = vld [vmem:[%s1534_s30 + $0x50] sm:$0xf]  ;;  %v937_v9 = vld [vmem:[%s1534_s30 + $0x40] sm:$0xf]  ;;  %1195 = vmatpush3.bf16.msra.mxu0 %v1596_v26  ;;  %1219 = vmatpush3.bf16.msra.mxu1 %v1596_v26 }
  0x1e   : > { %v942_v10 = vld [vmem:[%s1534_s30 + $0x54] sm:$0xf]  ;;  %v941_v11 = vld [vmem:[%s1534_s30 + $0x44] sm:$0xf]  ;;  %v208_v12 = vld [vmem:[%s1534_s30] sm:$0xf]  ;;  %1196 = vmatprep.subr.bf16.mxu0 %v1437_v7  ;;  %1220 = vmatprep.subr.bf16.mxu1 %v1437_v7 }
  0x1f   : > { %v209_v13 = vld [vmem:[%s1534_s30 + $0x10] sm:$0xf]  ;;  %213 = vst.msk [vmem:[#allocation2] sm:$0xf] %vm212_vm1, %v208_v12  ;;  %v946_v17 = vld [vmem:[%s1534_s30 + $0x58] sm:$0xf] }
  0x20   : > { %254 = vrot.lane.b32.xlu1 %v930_v3, %s1435_s4  ;;  %228 = vrot.lane.b32.xlu0 %v926_v4, %s1436_s5  ;;  %214 = vst.msk [vmem:[#allocation2 + $0x4] sm:$0xf] %vm212_vm1, %v209_v13  ;;  %v945_v18 = vld [vmem:[%s1534_s30 + $0x48] sm:$0xf]  ;;  %v950_v24 = vld [vmem:[%s1534_s30 + $0x5c] sm:$0xf] }
  0x21   : > { %v949_v25 = vld [vmem:[%s1534_s30 + $0x4c] sm:$0xf]  ;;  %v954_v29 = vld [vmem:[%s1534_s30 + $0x90] sm:$0xf]  ;;  %v953_v30 = vld [vmem:[%s1534_s30 + $0x80] sm:$0xf]  ;;  %1198 = vmatpush3.bf16.msra.mxu0 %v1613_v32  ;;  %1222 = vmatpush3.bf16.msra.mxu1 %v1613_v32 }
  0x22   : > { %v958_v31 = vld [vmem:[%s1534_s30 + $0x94] sm:$0xf]  ;;  %v957_v35 = vld [vmem:[%s1534_s30 + $0x84] sm:$0xf]  ;;  %v211_v36 = vld [vmem:[%s1534_s30 + $0x30] sm:$0xf]  ;;  %1199 = vmatprep.subr.bf16.mxu0 %v1437_v7  ;;  %1223 = vmatprep.subr.bf16.mxu1 %v1437_v7 }
  0x23   : > { %v210_v37 = vld [vmem:[%s1534_s30 + $0x20] sm:$0xf]  ;;  %216 = vst.msk [vmem:[#allocation2 + $0xc] sm:$0xf] %vm212_vm1, %v211_v36  ;;  %v962_v41 = vld [vmem:[%s1534_s30 + $0x98] sm:$0xf] }
  0x24   : > { %280 = vrot.lane.b32.xlu1 %v934_v5, %s1438_s6  ;;  %278 = vrot.lane.b32.xlu0 %v933_v6, %s1438_s6  ;;  %215 = vst.msk [vmem:[#allocation2 + $0x8] sm:$0xf] %vm212_vm1, %v210_v37  ;;  %v961_v42 = vld [vmem:[%s1534_s30 + $0x88] sm:$0xf]  ;;  %v966_v46 = vld [vmem:[%s1534_s30 + $0x9c] sm:$0xf] }
  0x25   : > { %1201 = vmatpush3.bf16.msra.mxu0 %v1632_v38  ;;  %1225 = vmatpush3.bf16.msra.mxu1 %v1632_v38  ;;  %v965_v47 = vld [vmem:[%s1534_s30 + $0x8c] sm:$0xf]  ;;  %v928_v51 = vld [vmem:[%s1534_s30 + $0x34] sm:$0xf]  ;;  %v927_v52 = vld [vmem:[%s1534_s30 + $0x24] sm:$0xf] }
  0x26   : > { %1202 = vmatprep.subr.bf16.mxu0 %v1437_v7  ;;  %1226 = vmatprep.subr.bf16.mxu1 %v1437_v7  ;;  %v932_v54 = vld [vmem:[%s1534_s30 + $0x38] sm:$0xf]  ;;  %v931_v55 = vld [vmem:[%s1534_s30 + $0x28] sm:$0xf]  ;;  %v936_v56 = vld [vmem:[%s1534_s30 + $0x3c] sm:$0xf] }
  0x27   : > { %v935_v57 = vld [vmem:[%s1534_s30 + $0x2c] sm:$0xf]  ;;  %v940_v58 = vld [vmem:[%s1534_s30 + $0x70] sm:$0xf]  ;;  %v939_v59 = vld [vmem:[%s1534_s30 + $0x60] sm:$0xf] }
  0x28   : > { %306 = vrot.lane.b32.xlu1 %v938_v8, %s1439_s7  ;;  %304 = vrot.lane.b32.xlu0 %v937_v9, %s1439_s7  ;;  %v944_v60 = vld [vmem:[%s1534_s30 + $0x74] sm:$0xf]  ;;  %v943_v61 = vld [vmem:[%s1534_s30 + $0x64] sm:$0xf] }
  0x29   : > { %1204 = vmatpush3.bf16.msra.mxu0 %v1652_v43  ;;  %1228 = vmatpush3.bf16.msra.mxu1 %v1652_v43  ;;  %v948_v62 = vld [vmem:[%s1534_s30 + $0x78] sm:$0xf]  ;;  %v947_v63 = vld [vmem:[%s1534_s30 + $0x68] sm:$0xf]  ;;  %v952_v1 = vld [vmem:[%s1534_s30 + $0x7c] sm:$0xf] }
  0x2a   : > { %1205 = vmatprep.subr.bf16.mxu0 %v1437_v7  ;;  %1229 = vmatprep.subr.bf16.mxu1 %v1437_v7  ;;  %v951_v2 = vld [vmem:[%s1534_s30 + $0x6c] sm:$0xf]  ;;  %v956_v3 = vld [vmem:[%s1534_s30 + $0xb0] sm:$0xf]  ;;  %v955_v4 = vld [vmem:[%s1534_s30 + $0xa0] sm:$0xf] }
  0x2b   : > { %v960_v5 = vld [vmem:[%s1534_s30 + $0xb4] sm:$0xf]  ;;  %v959_v6 = vld [vmem:[%s1534_s30 + $0xa4] sm:$0xf]  ;;  %v964_v8 = vld [vmem:[%s1534_s30 + $0xb8] sm:$0xf] }
  0x2c   : > { %332 = vrot.lane.b32.xlu1 %v942_v10, %s1440_s10  ;;  %330 = vrot.lane.b32.xlu0 %v941_v11, %s1440_s10  ;;  %v963_v9 = vld [vmem:[%s1534_s30 + $0xa8] sm:$0xf]  ;;  %v968_v10 = vld [vmem:[%s1534_s30 + $0xbc] sm:$0xf] }
  0x2d   : > { %1207 = vmatpush3.bf16.msra.mxu0 %v1668_v48  ;;  %1231 = vmatpush3.bf16.msra.mxu1 %v1668_v48  ;;  %v967_v11 = vld [vmem:[%s1534_s30 + $0xac] sm:$0xf]  ;;  %s188_s30 = sand.u32 1, %s1416_s13  }
  0x2e   : > { %1208 = vmatprep.subr.bf16.mxu0 %v1437_v7  ;;  %1232 = vmatprep.subr.bf16.mxu1 %v1437_v7  ;;  %s1824_s21 = scalar_lea.sflag [#allocation4], %s188_s30 }
  0x30   : > { %358 = vrot.lane.b32.xlu1 %v946_v17, %s1441_s27  ;;  %356 = vrot.lane.b32.xlu0 %v945_v18, %s1441_s27 }
  0x31   : > { %1210 = vmatpush3.bf16.msra.mxu0 %v1684_v53  ;;  %1234 = vmatpush3.bf16.msra.mxu1 %v1684_v53 }
  0x32   : > { %1235 = vmatprep.subr.bf16.mxu0 %v1437_v7  ;;  %1259 = vmatprep.subr.bf16.mxu1 %v1437_v7 }
  0x34   : > { %384 = vrot.lane.b32.xlu1 %v950_v24, %s1442_s11  ;;  %382 = vrot.lane.b32.xlu0 %v949_v25, %s1442_s11 }
  0x38   : > { %410 = vrot.lane.b32.xlu1 %v954_v29, %s1443_s26  ;;  %408 = vrot.lane.b32.xlu0 %v953_v30, %s1443_s26 }
  0x3c   : > { %436 = vrot.lane.b32.xlu1 %v958_v31, %s1444_s18  ;;  %434 = vrot.lane.b32.xlu0 %v957_v35, %s1444_s18 }
  0x40   : > { %462 = vrot.lane.b32.xlu1 %v962_v41, %s1446_s29  ;;  %460 = vrot.lane.b32.xlu0 %v961_v42, %s1446_s29 }
  0x44   : > { %488 = vrot.lane.b32.xlu1 %v966_v46, %s1447_s23  ;;  %486 = vrot.lane.b32.xlu0 %v965_v47, %s1447_s23 }
  0x48   : > { %232 = vrot.lane.b32.xlu1 %v928_v51, %s1436_s5  ;;  %230 = vrot.lane.b32.xlu0 %v927_v52, %s1436_s5 }
  0x4c   : > { %258 = vrot.lane.b32.xlu1 %v932_v54, %s1435_s4  ;;  %256 = vrot.lane.b32.xlu0 %v931_v55, %s1435_s4  ;;  %s923_s4 = sshll.u32 %s188_s30, 4 }
  0x50   : > { %284 = vrot.lane.b32.xlu1 %v936_v56, %s1438_s6  ;;  %282 = vrot.lane.b32.xlu0 %v935_v57, %s1438_s6 }
  0x54   : > { %310 = vrot.lane.b32.xlu1 %v940_v58, %s1439_s7  ;;  %308 = vrot.lane.b32.xlu0 %v939_v59, %s1439_s7 }
  0x58   : > { %336 = vrot.lane.b32.xlu1 %v944_v60, %s1440_s10  ;;  %334 = vrot.lane.b32.xlu0 %v943_v61, %s1440_s10  ;;  %s190_s10 = scalar_lea.vmem [#allocation3], %s923_s4 }
  0x5c   : > { %362 = vrot.lane.b32.xlu1 %v948_v62, %s1441_s27  ;;  %360 = vrot.lane.b32.xlu0 %v947_v63, %s1441_s27  ;;  %s836_s27 = sshll.u32 %s190_s10, 4  ;;  %s1817_s27 = int_to_ptr.vmem [resolvable:$true] %s836_s27 }
  0x60   : > { %388 = vrot.lane.b32.xlu1 %v952_v1, %s1442_s11  ;;  %386 = vrot.lane.b32.xlu0 %v951_v2, %s1442_s11  ;;  %s978_s11 = sshll.u32 %s1424_s15, 8  ;;  %s1354_s15 = scalar_lea.vmem %s1817_s27, 256 }
  0x61   : > { %p1355_p12 = scmp.ne.s32.totalorder %s1817_s27, %s1354_s15 }
  0x63   : > { %p1356_p13 = pnand %p1355_p12, %p1510_p4 }
  0x64   : > { %414 = vrot.lane.b32.xlu1 %v956_v3, %s1443_s26  ;;  %412 = vrot.lane.b32.xlu0 %v955_v4, %s1443_s26 }
  0x65   : > { %p1357_p0 = pneg %p1356_p13 }
  0x68   : > { %440 = vrot.lane.b32.xlu1 %v960_v5, %s1444_s18  ;;  %438 = vrot.lane.b32.xlu0 %v959_v6, %s1444_s18 }
  0x6c   : > { %466 = vrot.lane.b32.xlu1 %v964_v8, %s1446_s29  ;;  %464 = vrot.lane.b32.xlu0 %v963_v9, %s1446_s29  ;;  %s1822_s29 = scalar_lea.hbm %s1874_s3, %s978_s11 }
  0x70   : > { %492 = vrot.lane.b32.xlu1 %v968_v10, %s1447_s23  ;;  %490 = vrot.lane.b32.xlu0 %v967_v11, %s1447_s23  ;;  %s1448_s23 = smov [#allocation3]  }
  0x71   : > { %s1358_s28 = sshll.u32 %s1448_s23, 4  ;;  %s1359_s28 = int_to_ptr.vmem [resolvable:$false] %s1358_s28 }
  0x72   : > { %s1360_s8 = scalar_lea.vmem %s1359_s28, 512  ;;  %p1361_p1 = scmp.lt.s32.totalorder %s1817_s27, %s1359_s28 }
  0x73   : > { %p1362_p2 = scmp.lt.s32.totalorder %s1360_s8, %s1354_s15 }
  0x75   : > { %p1363_p3 = por %p1362_p2, %p1361_p1 }
  0x77   : > { %p1364_p5 = pnand %p1363_p3, %p1357_p0 }
  0x8e   : > { %v253_v12 = vpop.permute.xlu1 %252  ;;  %v227_v13 = vpop.permute.xlu0 %226 }
  0x8f   : > { %239 = vst.msk [vmem:[#allocation2] sm:$0xf] %vm238_vm3, %v227_v13 }
  0x90   : > { %265 = vst.msk [vmem:[#allocation2] sm:$0xf] %vm264_vm4, %v253_v12 }
  0x92   : > { %v255_v14 = vpop.permute.xlu1 %254  ;;  %v229_v15 = vpop.permute.xlu0 %228 }
  0x93   : > { %240 = vst.msk [vmem:[#allocation2 + $0x4] sm:$0xf] %vm238_vm3, %v229_v15 }
  0x94   : > { %266 = vst.msk [vmem:[#allocation2 + $0x4] sm:$0xf] %vm264_vm4, %v255_v14 }
  0x96   : > { %v281_v16 = vpop.permute.xlu1 %280  ;;  %v279_v17 = vpop.permute.xlu0 %278 }
  0x97   : > { %292 = vst.msk [vmem:[#allocation2 + $0x4] sm:$0xf] %vm290_vm5, %v281_v16  ;;  %291 = vst.msk [vmem:[#allocation2] sm:$0xf] %vm290_vm5, %v279_v17 }
  0x9a   : > { %v307_v18 = vpop.permute.xlu1 %306  ;;  %v305_v20 = vpop.permute.xlu0 %304 }
  0x9b   : > { %318 = vst.msk [vmem:[#allocation2 + $0x4] sm:$0xf] %vm316_vm6, %v307_v18  ;;  %317 = vst.msk [vmem:[#allocation2] sm:$0xf] %vm316_vm6, %v305_v20 }
  0x9e   : > { %v333_v22 = vpop.permute.xlu1 %332  ;;  %v331_v23 = vpop.permute.xlu0 %330 }
  0x9f   : > { %344 = vst.msk [vmem:[#allocation2 + $0x4] sm:$0xf] %vm342_vm7, %v333_v22  ;;  %343 = vst.msk [vmem:[#allocation2] sm:$0xf] %vm342_vm7, %v331_v23 }
  0xa2   : > { %v359_v24 = vpop.permute.xlu1 %358  ;;  %v357_v25 = vpop.permute.xlu0 %356 }
  0xa3   : > { %370 = vst.msk [vmem:[#allocation2 + $0x4] sm:$0xf] %vm368_vm8, %v359_v24  ;;  %369 = vst.msk [vmem:[#allocation2] sm:$0xf] %vm368_vm8, %v357_v25 }
  0xa6   : > { %v385_v27 = vpop.permute.xlu1 %384  ;;  %v383_v28 = vpop.permute.xlu0 %382 }
  0xa7   : > { %396 = vst.msk [vmem:[#allocation2 + $0x4] sm:$0xf] %vm394_vm9, %v385_v27  ;;  %395 = vst.msk [vmem:[#allocation2] sm:$0xf] %vm394_vm9, %v383_v28 }
  0xaa   : > { %v411_v29 = vpop.permute.xlu1 %410  ;;  %v409_v30 = vpop.permute.xlu0 %408 }
  0xab   : > { %422 = vst.msk [vmem:[#allocation2 + $0x4] sm:$0xf] %vm420_vm10, %v411_v29  ;;  %421 = vst.msk [vmem:[#allocation2] sm:$0xf] %vm420_vm10, %v409_v30 }
  0xae   : > { %v437_v31 = vpop.permute.xlu1 %436  ;;  %v435_v33 = vpop.permute.xlu0 %434 }
  0xaf   : > { %448 = vst.msk [vmem:[#allocation2 + $0x4] sm:$0xf] %vm446_vm11, %v437_v31  ;;  %447 = vst.msk [vmem:[#allocation2] sm:$0xf] %vm446_vm11, %v435_v33 }
  0xb2   : > { %v463_v34 = vpop.permute.xlu1 %462  ;;  %v461_v35 = vpop.permute.xlu0 %460 }
  0xb3   : > { %474 = vst.msk [vmem:[#allocation2 + $0x4] sm:$0xf] %vm472_vm12, %v463_v34  ;;  %473 = vst.msk [vmem:[#allocation2] sm:$0xf] %vm472_vm12, %v461_v35 }
  0xb6   : > { %v489_v36 = vpop.permute.xlu1 %488  ;;  %v487_v37 = vpop.permute.xlu0 %486 }
  0xb7   : > { %500 = vst.msk [vmem:[#allocation2 + $0x4] sm:$0xf] %vm498_vm13, %v489_v36  ;;  %499 = vst.msk [vmem:[#allocation2] sm:$0xf] %vm498_vm13, %v487_v37 }
  0xba   : > { %v233_v39 = vpop.permute.xlu1 %232  ;;  %v231_v40 = vpop.permute.xlu0 %230 }
  0xbb   : > { %242 = vst.msk [vmem:[#allocation2 + $0xc] sm:$0xf] %vm238_vm3, %v233_v39  ;;  %241 = vst.msk [vmem:[#allocation2 + $0x8] sm:$0xf] %vm238_vm3, %v231_v40 }
  0xbe   : > { %v259_v41 = vpop.permute.xlu1 %258  ;;  %v257_v42 = vpop.permute.xlu0 %256  ;;  %v520_v44 = vld [vmem:[#allocation2] sm:$0xf]  ;;  %v599_v45 = vld [vmem:[#allocation2 + $0x4] sm:$0xf] }
  0xbf   : > { %268 = vst.msk [vmem:[#allocation2 + $0xc] sm:$0xf] %vm264_vm4, %v259_v41  ;;  %267 = vst.msk [vmem:[#allocation2 + $0x8] sm:$0xf] %vm264_vm4, %v257_v42  ;;  %1080 = vmatmul.mubr.f32.vlgmr.msra.gmra.mrb[0].mxu0 %v520_v44  ;;  %1115 = vmatmul.mubr.f32.vlgmr.msra.gmra.mrb[0].mxu1 %v599_v45 }
  0xc0   : > { %1237 = vmatpush3.bf16.msra.mxu0 %v1573_v19  ;;  %1261 = vmatpush3.bf16.msra.mxu1 %v1573_v19 }
  0xc1   : > { %1238 = vmatprep.subr.bf16.mxu0 %v1437_v7  ;;  %1262 = vmatprep.subr.bf16.mxu1 %v1437_v7 }
  0xc2   : > { %v285_v46 = vpop.permute.xlu1 %284  ;;  %v283_v47 = vpop.permute.xlu0 %282  ;;  %1149 = vmatprep.mubr.msk.f32.mxu0 %vm1445_vm2, %v1434_v0  ;;  %1184 = vmatprep.mubr.msk.f32.mxu1 %vm1445_vm2, %v1434_v0 }
  0xc3   : > { %294 = vst.msk [vmem:[#allocation2 + $0xc] sm:$0xf] %vm290_vm5, %v285_v46  ;;  %293 = vst.msk [vmem:[#allocation2 + $0x8] sm:$0xf] %vm290_vm5, %v283_v47 }
  0xc4   : > { %1240 = vmatpush3.bf16.msra.mxu0 %v1580_v21  ;;  %1264 = vmatpush3.bf16.msra.mxu1 %v1580_v21 }
  0xc5   : > { %1241 = vmatprep.subr.bf16.mxu0 %v1437_v7  ;;  %1265 = vmatprep.subr.bf16.mxu1 %v1437_v7 }
  0xc6   : > { %v311_v19 = vpop.permute.xlu1 %310  ;;  %v309_v49 = vpop.permute.xlu0 %308 }
  0xc7   : > { %320 = vst.msk [vmem:[#allocation2 + $0xc] sm:$0xf] %vm316_vm6, %v311_v19  ;;  %319 = vst.msk [vmem:[#allocation2 + $0x8] sm:$0xf] %vm316_vm6, %v309_v49 }
  0xc8   : > { %1243 = vmatpush3.bf16.msra.mxu0 %v1596_v26  ;;  %1267 = vmatpush3.bf16.msra.mxu1 %v1596_v26 }
  0xc9   : > { %1244 = vmatprep.subr.bf16.mxu0 %v1437_v7  ;;  %1268 = vmatprep.subr.bf16.mxu1 %v1437_v7 }
  0xca   : > { %v337_v0 = vpop.permute.xlu1 %336  ;;  %v335_v21 = vpop.permute.xlu0 %334 }
  0xcb   : > { %346 = vst.msk [vmem:[#allocation2 + $0xc] sm:$0xf] %vm342_vm7, %v337_v0  ;;  %345 = vst.msk [vmem:[#allocation2 + $0x8] sm:$0xf] %vm342_vm7, %v335_v21 }
  0xcc   : > { %1246 = vmatpush3.bf16.msra.mxu0 %v1613_v32  ;;  %1270 = vmatpush3.bf16.msra.mxu1 %v1613_v32 }
  0xcd   : > { %1247 = vmatprep.subr.bf16.mxu0 %v1437_v7  ;;  %1271 = vmatprep.subr.bf16.mxu1 %v1437_v7 }
  0xce   : > { %v363_v50 = vpop.permute.xlu1 %362  ;;  %v361_v26 = vpop.permute.xlu0 %360 }
  0xcf   : > { %372 = vst.msk [vmem:[#allocation2 + $0xc] sm:$0xf] %vm368_vm8, %v363_v50  ;;  %371 = vst.msk [vmem:[#allocation2 + $0x8] sm:$0xf] %vm368_vm8, %v361_v26 }
  0xd0   : > { %1249 = vmatpush3.bf16.msra.mxu0 %v1632_v38  ;;  %1273 = vmatpush3.bf16.msra.mxu1 %v1632_v38 }
  0xd1   : > { %1250 = vmatprep.subr.bf16.mxu0 %v1437_v7  ;;  %1274 = vmatprep.subr.bf16.mxu1 %v1437_v7 }
  0xd2   : > { %v389_v51 = vpop.permute.xlu1 %388  ;;  %v387_v32 = vpop.permute.xlu0 %386 }
  0xd3   : > { %398 = vst.msk [vmem:[#allocation2 + $0xc] sm:$0xf] %vm394_vm9, %v389_v51  ;;  %397 = vst.msk [vmem:[#allocation2 + $0x8] sm:$0xf] %vm394_vm9, %v387_v32 }
  0xd4   : > { %1252 = vmatpush3.bf16.msra.mxu0 %v1652_v43  ;;  %1276 = vmatpush3.bf16.msra.mxu1 %v1652_v43 }
  0xd5   : > { %1253 = vmatprep.subr.bf16.mxu0 %v1437_v7  ;;  %1277 = vmatprep.subr.bf16.mxu1 %v1437_v7 }
  0xd6   : > { %v415_v52 = vpop.permute.xlu1 %414  ;;  %v413_v38 = vpop.permute.xlu0 %412 }
  0xd7   : > { %424 = vst.msk [vmem:[#allocation2 + $0xc] sm:$0xf] %vm420_vm10, %v415_v52  ;;  %423 = vst.msk [vmem:[#allocation2 + $0x8] sm:$0xf] %vm420_vm10, %v413_v38 }
  0xd8   : > { %1255 = vmatpush3.bf16.msra.mxu0 %v1668_v48  ;;  %1279 = vmatpush3.bf16.msra.mxu1 %v1668_v48 }
  0xd9   : > { %1256 = vmatprep.subr.bf16.mxu0 %v1437_v7  ;;  %1280 = vmatprep.subr.bf16.mxu1 %v1437_v7 }
  0xda   : > { %v441_v54 = vpop.permute.xlu1 %440  ;;  %v439_v43 = vpop.permute.xlu0 %438 }
  0xdb   : > { %450 = vst.msk [vmem:[#allocation2 + $0xc] sm:$0xf] %vm446_vm11, %v441_v54  ;;  %449 = vst.msk [vmem:[#allocation2 + $0x8] sm:$0xf] %vm446_vm11, %v439_v43 }
  0xdc   : > { %1258 = vmatpush3.bf16.msra.mxu0 %v1684_v53  ;;  %1282 = vmatpush3.bf16.msra.mxu1 %v1684_v53  ;;  %v969_v53 = vld [vmem:[%s1873_s2] ss:$0 sm:$0xff] }
  0xde   : > { %v467_v55 = vpop.permute.xlu1 %466  ;;  %v465_v56 = vpop.permute.xlu0 %464 }
  0xdf   : > { %476 = vst.msk [vmem:[#allocation2 + $0xc] sm:$0xf] %vm472_vm12, %v467_v55  ;;  %475 = vst.msk [vmem:[#allocation2 + $0x8] sm:$0xf] %vm472_vm12, %v465_v56 }
  0xe2   : > { %v493_v48 = vpop.permute.xlu1 %492  ;;  %v491_v57 = vpop.permute.xlu0 %490 }
  0xe3   : > { %502 = vst.msk [vmem:[#allocation2 + $0xc] sm:$0xf] %vm498_vm13, %v493_v48  ;;  %501 = vst.msk [vmem:[#allocation2 + $0x8] sm:$0xf] %vm498_vm13, %v491_v57 }
  0xea   : > { %v673_v7 = vld [vmem:[#allocation2 + $0x8] sm:$0xf]  ;;  %v747_v58 = vld [vmem:[#allocation2 + $0xc] sm:$0xf] }
  0xeb   : > { %1150 = vmatmul.mubr.f32.vlgmr.msra.gmra.mrb[2].mxu0 %v673_v7  ;;  %1185 = vmatmul.mubr.f32.vlgmr.msra.gmra.mrb[2].mxu1 %v747_v58 }
 0x192   : > { %v593_v59 = vpop.f32.mrb[0].mxu0  ;;  %v666_v60 = vpop.f32.mrb[0].mxu1 }
 0x193   : > { %v594_v61 = vadd.f32 %v969_v53, %v593_v59  ;;  %v667_v62 = vadd.f32 %v969_v53, %v666_v60  ;;  %v1081_v63 = vpop.f32.mrb[1].mxu0  ;;  %v1116_v1 = vpop.f32.mrb[1].mxu1 }
 0x195   : > { %597 = vst [vmem:[%s190_s10] sm:$0xf] %v594_v61  ;;  %970 = vst [vmem:[%s190_s10 + $0x4] sm:$0xf] %v667_v62 }
 0x1be   : > { %v740_v2 = vpop.f32.mrb[2].mxu0  ;;  %v814_v3 = vpop.f32.mrb[2].mxu1 }
 0x1bf   : > { %v741_v4 = vadd.f32 %v969_v53, %v740_v2  ;;  %v815_v5 = vadd.f32 %v969_v53, %v814_v3  ;;  %v1151_v6 = vpop.f32.mrb[3].mxu0  ;;  %v1186_v8 = vpop.f32.mrb[3].mxu1 }
 0x1c1   : > { %971 = vst [vmem:[%s190_s10 + $0x8] sm:$0xf] %v741_v4  ;;  %972 = vst [vmem:[%s190_s10 + $0xc] sm:$0xf] %v815_v5 }
 0x1c2   : > { %1367 = shalt.err (!%p1364_p5)
}
 0x1c3   : > { %s1368_s9 = scalar_lea.hbm %s1822_s29, 256  ;;  %s1372_s4 = scalar_lea.hbm %s1874_s3, 512 }
 0x1c4   : > { %p1369_p6 = scmp.ne.s32.totalorder %s1822_s29, %s1368_s9  ;;  %p1373_p10 = scmp.lt.u32.totalorder %s1822_s29, %s1874_s3 }
 0x1c5   : > { %p1374_p11 = scmp.lt.u32.totalorder %s1372_s4, %s1368_s9  ;;  %p1376_p13 = scmp.lt.u32.totalorder %s1368_s9, %s1822_s29 }
 0x1c6   : > { %p1370_p7 = pnand %p1369_p6, %p1510_p4 }
 0x1c7   : > { %p1375_p12 = por %p1374_p11, %p1373_p10 }
 0x1c8   : > { %p1371_p9 = pneg %p1370_p7 }
 0x1c9   : > { %p1377_p0 = por %p1376_p13, %p1375_p12 }
 0x1cb   : > { %p1378_p1 = pnand %p1377_p0, %p1371_p9 }
 0x1cd   : > { %1381 = shalt.err (!%p1378_p1)
}
 0x1ce   : > { %s1449_s10 = smov 64  }
 0x1cf   : > { %1284 = dma.vmem_to_hbm [thread:$0]  (%p1510_p4), %s1817_s27, 256, %s1822_s29, %s1824_s21, %s1449_s10, %s1449_s10, %s1436_s5  }
 0x1d0 PF: > { %p1290_p2 = scmp.ge.s32.totalorder %s1432_s17, 2  ;;  %s851_s11 = sand.u32 1, %s1412_s12  }
 0x1d1   : > { %s852_s26 = scalar_lea.sflag [#allocation4], %s851_s11 }
 0x1d2   : > { %p1287_p3 = pnand %p1290_p2, %p1517_p8 }
 0x1d4   : > { %1407 = dma.done.wait (!%p1287_p3), %s852_s26, 256  }
 0x1d5   : > { %1409 = vsyncadd (!%p1287_p3), %s852_s26, 4294967040  ;;  %s16_s17 = sadd.s32 1, %s1432_s17   ;;  %s1877_s12 = smov %s1416_s13 }
 0x1d6   : > { %p13_p5 = scmp.ge.s32.totalorder %s16_s17, 4   ;;  %s1878_s13 = smov %s1420_s14 }
 0x1d7   : > { %s1879_s14 = smov %s1523_s25  ;;  %s1880_s15 = smov %s1428_s16 }
 0x1d8   : > { %s1881_s16 = smov %s1883_s20  ;;  %15 = sbr.rel (!%p13_p5) target bundleno = 4 (0x4), region = 84 }
 0x1df   :  { %857 = vsyncpa [#allocation4], 1 }
 0x1e0   :  { %859 = vsyncpa [#allocation4 + $0x1], 1 }

</bundles_post_ra>
